<compile_context>
chip_gen: v5e
topology: v5e:2x2
jax: 0.10.0
libtpu: 0.0.40
codegen_flags: <defaults>
</compile_context>

<pallas_src>
import jax
import jax.numpy as jnp
from jax.experimental import pallas as pl
from jax.experimental.pallas import tpu as pltpu


# ---------------------------------------------------------------------------
# Pallas kernel: per-block partial sum of signed logsigmoid contributions
# ---------------------------------------------------------------------------
def _nce_block_kernel(meta_ref, le_ref, re_ref, out_ref):
    # meta_ref : SMEM (2,) int32   -> [bs, n_valid]
    # le_ref   : VMEM (TILE_N, D)  -> gathered "left"  embedding rows
    # re_ref   : VMEM (TILE_N, D)  -> gathered "right" embedding rows
    # out_ref  : VMEM (8, 128)     -> per-block partial sum at [0, 0]
    i = pl.program_id(0)
    tile_n = le_ref.shape[0]

    bs = meta_ref[0]
    n_valid = meta_ref[1]

    # Per-row dot product: lane-axis (D) reduce on the XLU.  Result is a 1-D
    # lane-major vector so the transcendentals below run on a dense layout.
    dot = jnp.sum(le_ref[...] * re_ref[...], axis=-1)          # (TILE_N,)

    # Global row index of every sample in this tile.
    row = jax.lax.broadcasted_iota(jnp.int32, (tile_n,), 0) + i * tile_n

    # Rows [0, bs) are positive pairs (+dot); rows [bs, n_valid) are negatives,
    # which the reference computes as sum(le * -re) == -dot.
    x = jnp.where(row < bs, dot, -dot)

    # Numerically stable log-sigmoid (matches F.logsigmoid).
    logsig = jnp.minimum(x, 0.0) - jnp.log1p(jnp.exp(-jnp.abs(x)))

    # Select (not multiply) so NaN/Inf from ragged-tail garbage cannot leak.
    masked = jnp.where(row < n_valid, logsig, jnp.float32(0.0))
    partial = jnp.sum(masked)

    # Lane-aligned (8, 128) output block; partial sum lives at [0, 0], rest 0.
    r = jax.lax.broadcasted_iota(jnp.int32, (8, 128), 0)
    c = jax.lax.broadcasted_iota(jnp.int32, (8, 128), 1)
    out_ref[...] = jnp.where((r == 0) & (c == 0), partial, jnp.float32(0.0))


def _tile_and_vmem(n_rows, d):
    """Pick (tile_n, vmem_limit_bytes) from a per-generation VMEM budget."""
    try:
        vmem_cap = int(pltpu.get_tpu_info().vmem_capacity_bytes)
    except Exception:
        vmem_cap = 64 * 1024 * 1024  # conservative (v7x per-core)
    vmem_limit = min(64 * 1024 * 1024, vmem_cap // 2)   # 32 MiB v7x, 64 MiB v5e/v6e
    budget = vmem_limit // 2                            # double-buffered input slabs
    tile = budget // (2 * 2 * d * 4)                    # 2 streams x 2 buffers x f32
    tile = max(128, (tile // 128) * 128)
    if tile >= n_rows:
        if n_rows >= 256:
            # Keep >= 2 blocks so the "parallel" axis can use both v7x TensorCores.
            tile = pl.cdiv(pl.cdiv(n_rows, 2), 128) * 128
        else:
            tile = n_rows                               # single full-extent block
    return tile, vmem_limit


def _nce_partial_sums(le, re, meta):
    """le, re: (N, D) float32 gathered rows; meta: int32 [bs, n_valid]."""
    n_rows, d = le.shape
    tile_n, vmem_limit = _tile_and_vmem(n_rows, d)
    num_blocks = pl.cdiv(n_rows, tile_n)

    return pl.pallas_call(
        _nce_block_kernel,
        out_shape=jax.ShapeDtypeStruct((num_blocks * 8, 128), jnp.float32),
        grid_spec=pltpu.PrefetchScalarGridSpec(
            num_scalar_prefetch=1,
            grid=(num_blocks,),
            in_specs=[
                pl.BlockSpec((tile_n, d), lambda i, meta_ref: (i, 0)),
                pl.BlockSpec((tile_n, d), lambda i, meta_ref: (i, 0)),
            ],
            out_specs=pl.BlockSpec((8, 128), lambda i, meta_ref: (i, 0)),
        ),
        compiler_params=pltpu.CompilerParams(
            dimension_semantics=("parallel",),
            vmem_limit_bytes=vmem_limit,
        ),
    )(meta, le, re)


@jax.jit
def _nce_loss_jit(left_tbl, right_tbl, left_idx, right_idx, meta):
    # Contiguous row gathers (no transpose, no pad) feed the kernel directly.
    le = jnp.take(left_tbl, left_idx, axis=0)    # (N, D)
    re = jnp.take(right_tbl, right_idx, axis=0)  # (N, D)
    partials = _nce_partial_sums(le, re, meta)   # (num_blocks*8, 128), zeros elsewhere
    # loss = -( sum_b logsig(pos_b) + sum_{b,k} logsig(neg_{b,k}) ) / bs
    return -jnp.sum(partials) / meta[0].astype(jnp.float32)


# ---------------------------------------------------------------------------
# Module equivalent (parameter setup + index plumbing in plain JAX)
# ---------------------------------------------------------------------------
class NetworkEmbedding:
    def __init__(self, node_emb, tag_embs):
        # nn.Embedding.from_pretrained(...).float()
        self.node_embeddings = jnp.asarray(node_emb, dtype=jnp.float32)  # (n_nodes, D)
        self.word_embeddings = jnp.asarray(tag_embs, dtype=jnp.float32)  # (n_tags, D)
        # NOTE: nn.CrossEntropyLoss member of the original module is never used
        # in forward(), so it is omitted here.

    def get_loss_w_neg(self, node_node, bs, num_samples, type_):
        # node_node: list (len bs) of lists (len num_samples) of (left, right) pairs;
        # element 0 is the positive pair, the rest are negatives.
        pos_left, pos_right = zip(*[i[0] for i in node_node])
        neg_left, neg_right = zip(*[j for i in node_node for j in i[1:]])

        # Single "left" / "right" streams: positives first, then negatives.
        left_idx = jnp.asarray(list(pos_left) + list(neg_left), dtype=jnp.int32)
        right_idx = jnp.asarray(list(pos_right) + list(neg_right), dtype=jnp.int32)

        right_tbl = self.node_embeddings if type_ == 'user' else self.word_embeddings

        n_valid = int(left_idx.shape[0])  # == bs * num_samples
        meta = jnp.asarray([bs, n_valid], dtype=jnp.int32)

        return _nce_loss_jit(self.node_embeddings, right_tbl, left_idx, right_idx, meta)

    def forward(self, node_node, type_):
        return self.get_loss_w_neg(node_node, len(node_node), len(node_node[0]), type_)

    __call__ = forward


# ---------------------------------------------------------------------------
# Pure-JAX reference for verification
# ---------------------------------------------------------------------------
def _reference_loss(model, node_node, type_):
    bs = len(node_node)
    num_samples = len(node_node[0])
    pos_left, pos_right = zip(*[i[0] for i in node_node])
    neg_left, neg_right = zip(*[j for i in node_node for j in i[1:]])
    pos_le = model.node_embeddings[jnp.asarray(pos_left, jnp.int32)]
    neg_le = model.node_embeddings[jnp.asarray(neg_left, jnp.int32)]
    tbl = model.node_embeddings if type_ == 'user' else model.word_embeddings
    pos_re = tbl[jnp.asarray(pos_right, jnp.int32)]
    neg_re = tbl[jnp.asarray(neg_right, jnp.int32)]
    pos_dot = jnp.sum(pos_le * pos_re, axis=1)
    neg_dot = jnp.sum(neg_le * -neg_re, axis=1).reshape((bs, num_samples - 1))
    return -(jax.nn.log_sigmoid(pos_dot)
             + jax.nn.log_sigmoid(neg_dot).sum(axis=1)).mean()


# ---------------------------------------------------------------------------
if __name__ == "__main__":
    key = jax.random.PRNGKey(0)
    k_node, k_tag, k_idx = jax.random.split(key, 3)

    n_nodes, n_tags, emb_dim = 32, 24, 32
    node_emb = jax.random.normal(k_node, (n_nodes, emb_dim), dtype=jnp.float32)
    tag_embs = jax.random.normal(k_tag, (n_tags, emb_dim), dtype=jnp.float32)

    model = NetworkEmbedding(node_emb, tag_embs)

    def make_node_node(k, bs, num_samples):
        idx = jax.random.randint(k, (bs, num_samples, 2), 0, min(n_nodes, n_tags))
        idx_host = jax.device_get(idx)
        return [[(int(idx_host[b, s, 0]), int(idx_host[b, s, 1]))
                 for s in range(num_samples)] for b in range(bs)]

    # Small single-block case, plus a case that exercises the multi-block
    # "parallel" grid with a ragged (masked) last block.
    cases = [(8, 5), (96, 7)]
    keys = jax.random.split(k_idx, len(cases))
    for (bs, num_samples), kk in zip(cases, keys):
        node_node = make_node_node(kk, bs, num_samples)
        for type_ in ('user', 'tag'):
            loss = jax.block_until_ready(model(node_node, type_))
            ref = _reference_loss(model, node_node, type_)
            assert jnp.allclose(loss, ref, rtol=1e-5, atol=1e-4), (bs, type_, loss, ref)

    print("KERNEL_OK")
</pallas_src>

<mosaic_0001>
module attributes {stable_mosaic.version = 11 : i64} {
  func.func @_nce_block_kernel(%arg0: i32, %arg1: memref<2xi32, #tpu.memory_space<smem>>, %arg2: memref<40x32xf32, #tpu.memory_space<vmem>>, %arg3: memref<40x32xf32, #tpu.memory_space<vmem>>, %arg4: memref<8x128xf32, #tpu.memory_space<vmem>>) attributes {dimension_semantics = [#tpu.dimension_semantics<parallel>], iteration_bounds = array<i64: 1>, scalar_prefetch = 1 : i64, scratch_operands = 0 : i64, tpu.core_type = #tpu.core_type<tc>, window_params = [{transform_indices = @transform_0, window_bounds = array<i64: 40, 32>}, {transform_indices = @transform_1, window_bounds = array<i64: 40, 32>}, {transform_indices = @transform_2, window_bounds = array<i64: 8, 128>}]} {
    %c0 = arith.constant 0 : index
    %0 = memref.load %arg1[%c0] : memref<2xi32, #tpu.memory_space<smem>>
    %c1 = arith.constant 1 : index
    %1 = memref.load %arg1[%c1] : memref<2xi32, #tpu.memory_space<smem>>
    %c0_0 = arith.constant 0 : index
    %c0_1 = arith.constant 0 : index
    %2 = vector.load %arg2[%c0_0, %c0_1] : memref<40x32xf32, #tpu.memory_space<vmem>>, vector<40x32xf32>
    %c0_2 = arith.constant 0 : index
    %c0_3 = arith.constant 0 : index
    %3 = vector.load %arg3[%c0_2, %c0_3] : memref<40x32xf32, #tpu.memory_space<vmem>>, vector<40x32xf32>
    %4 = arith.mulf %2, %3 : vector<40x32xf32>
    %cst = arith.constant dense<0.000000e+00> : vector<40xf32>
    %5 = vector.multi_reduction <add>, %4, %cst [1] : vector<40x32xf32> to vector<40xf32>
    %6 = tpu.iota {dimensions = array<i32: 1>} : vector<1x40xi32>
    %7 = vector.shape_cast %6 : vector<1x40xi32> to vector<40xi32>
    %c40_i32 = arith.constant 40 : i32
    %8 = arith.muli %arg0, %c40_i32 : i32
    %9 = vector.broadcast %8 : i32 to vector<40xi32>
    %10 = arith.addi %7, %9 : vector<40xi32>
    %11 = vector.broadcast %0 : i32 to vector<40xi32>
    %12 = arith.cmpi slt, %10, %11 : vector<40xi32>
    %cst_4 = arith.constant 0.000000e+00 : f32
    %13 = vector.broadcast %cst_4 : f32 to vector<40xf32>
    %14 = arith.subf %13, %5 : vector<40xf32>
    %15 = arith.select %12, %5, %14 : vector<40xi1>, vector<40xf32>
    %cst_5 = arith.constant 0.000000e+00 : f32
    %16 = vector.broadcast %cst_5 : f32 to vector<40xf32>
    %17 = arith.minimumf %15, %16 : vector<40xf32>
    %18 = math.absf %15 : vector<40xf32>
    %cst_6 = arith.constant 0.000000e+00 : f32
    %19 = vector.broadcast %cst_6 : f32 to vector<40xf32>
    %20 = arith.subf %19, %18 : vector<40xf32>
    %21 = math.exp %20 : vector<40xf32>
    %22 = math.log1p %21 : vector<40xf32>
    %23 = arith.subf %17, %22 : vector<40xf32>
    %24 = vector.broadcast %1 : i32 to vector<40xi32>
    %25 = arith.cmpi slt, %10, %24 : vector<40xi32>
    %cst_7 = arith.constant 0.000000e+00 : f32
    %26 = vector.broadcast %cst_7 : f32 to vector<40xf32>
    %27 = arith.select %25, %23, %26 : vector<40xi1>, vector<40xf32>
    %28 = vector.shape_cast %27 : vector<40xf32> to vector<1x40xf32>
    %cst_8 = arith.constant dense<0.000000e+00> : vector<1xf32>
    %29 = vector.multi_reduction <add>, %28, %cst_8 [1] : vector<1x40xf32> to vector<1xf32>
    %30 = vector.shape_cast %29 : vector<1xf32> to vector<1x1xf32>
    %31 = vector.extract %30[0, 0] : f32 from vector<1x1xf32>
    %32 = tpu.iota {dimensions = array<i32: 0>} : vector<8x128xi32>
    %33 = tpu.iota {dimensions = array<i32: 1>} : vector<8x128xi32>
    %c0_i32 = arith.constant 0 : i32
    %34 = vector.broadcast %c0_i32 : i32 to vector<8x128xi32>
    %35 = arith.cmpi eq, %32, %34 : vector<8x128xi32>
    %c0_i32_9 = arith.constant 0 : i32
    %36 = vector.broadcast %c0_i32_9 : i32 to vector<8x128xi32>
    %37 = arith.cmpi eq, %33, %36 : vector<8x128xi32>
    %38 = arith.andi %35, %37 : vector<8x128xi1>
    %cst_10 = arith.constant 0.000000e+00 : f32
    %39 = vector.broadcast %31 : f32 to vector<8x128xf32>
    %40 = vector.broadcast %cst_10 : f32 to vector<8x128xf32>
    %41 = arith.select %38, %39, %40 : vector<8x128xi1>, vector<8x128xf32>
    %c0_11 = arith.constant 0 : index
    %c0_12 = arith.constant 0 : index
    %42 = vector.load %arg4[%c0_11, %c0_12] : memref<8x128xf32, #tpu.memory_space<vmem>>, vector<8x128xf32>
    tpu.vector_store %arg4[%c0_11, %c0_12], %41 {strides = array<i32>} : memref<8x128xf32, #tpu.memory_space<vmem>>, vector<8x128xf32>,
    return
  }
  func.func @transform_0(%arg0: i32, %arg1: memref<2xi32, #tpu.memory_space<smem>>) -> (i32, i32) {
    %c0_i32 = arith.constant 0 : i32
    %c0_i32_0 = arith.constant 0 : i32
    return %arg0, %c0_i32 : i32, i32
  }
  func.func @transform_1(%arg0: i32, %arg1: memref<2xi32, #tpu.memory_space<smem>>) -> (i32, i32) {
    %c0_i32 = arith.constant 0 : i32
    %c0_i32_0 = arith.constant 0 : i32
    return %arg0, %c0_i32 : i32, i32
  }
  func.func @transform_2(%arg0: i32, %arg1: memref<2xi32, #tpu.memory_space<smem>>) -> (i32, i32) {
    %c0_i32 = arith.constant 0 : i32
    %c0_i32_0 = arith.constant 0 : i32
    return %arg0, %c0_i32 : i32, i32
  }
}

</mosaic_0001>

<bundles_post_ra>
// kernel: _nce_loss_jit.1
= control target key start
LH: loop header
LB: loop body
LE: loop exit
PB: predicated region body
PF: predicated region fallthrough
CT: control target
= control target key end

     0   :  { %s161_s15 = smov [#allocation3]   ;;  %s245_s0 = inlined_call_operand.vmem [shape: s32[2], index: 0, kind: input, shape index: {}]   ;;  %s246_s1 = inlined_call_operand.vmem [shape: f32[40,32], index: 1, kind: input, shape index: {}]   ;;  %s247_s2 = inlined_call_operand.vmem [shape: f32[40,32], index: 2, kind: input, shape index: {}]   ;;  %s248_s3 = inlined_call_operand.vmem [shape: f32[8,128], index: 3, kind: output, shape index: {}]  }
   0x1   :  { %s9_s14 = sshll.u32 %s245_s0, 4  ;;  %s10_s14 = int_to_ptr.vmem [resolvable:$true] %s9_s14 }
   0x2   :  { %12 = dma.vmem_to_smem %s10_s14, 16, %s161_s15, [#allocation2] }
   0x3   :  { %159 = dma.done.wait [#allocation2], 16 }
   0x4   :  { %160 = vsyncadd [#allocation2], 4294967280 }
   0x5   :  { %15 = sfence }
   0x6   :  { %v22_v0 = vld [vmem:[%s246_s1] sm:$0xff]  ;;  %vm37_vm0 = vcmask 261120   ;;  %v24_v2 = vld [vmem:[%s246_s1 + $0x10] sm:$0xff]  ;;  %v23_v6 = vld [vmem:[%s246_s1 + $0x8] sm:$0xff]  ;;  %v53_v20 = vlaneseq  ;;  %vm73_vm1 = vcmask 130112   ;;  %vm77_vm2 = vcmask 195712  }
   0x7   :  { %v27_v1 = vld [vmem:[%s247_s2] sm:$0xff]  ;;  %v29_v4 = vld [vmem:[%s247_s2 + $0x10] sm:$0xff]  ;;  %v28_v7 = vld [vmem:[%s247_s2 + $0x8] sm:$0xff]  ;;  %vm81_vm3 = vcmask 261312   ;;  %vm85_vm4 = vcmask 326912   ;;  %vm122_vm8 = vcmask 319488  }
   0x8   :  { %v32_v3 = vmul.f32 %v27_v1, %v22_v0  ;;  %v34_v5 = vmul.f32 %v29_v4, %v24_v2  ;;  %v26_v8 = vld [vmem:[%s246_s1 + $0x20] sm:$0xff]  ;;  %v25_v10 = vld [vmem:[%s246_s1 + $0x18] sm:$0xff]  ;;  %v33_v15 = vmul.f32 %v28_v7, %v23_v6  ;;  %v221_v23 = vand.u32 127, %v53_v20  ;;  %s223_s1 = sld [smem:[#allocation3]] }
   0x9   :  { %v30_v11 = vld [vmem:[%s247_s2 + $0x18] sm:$0xff]  ;;  %v31_v12 = vld [vmem:[%s247_s2 + $0x20] sm:$0xff]  ;;  %s139_s2 = sld [smem:[#allocation3 + $0x1]] }
   0xa   :  { %v38_v9 = vsel %vm37_vm0, %v32_v3, 0.0  ;;  %v44_v13 = vsel %vm37_vm0, %v34_v5, 0.0  ;;  %v36_v14 = vmul.f32 %v31_v12, %v26_v8  ;;  %v35_v16 = vmul.f32 %v30_v11, %v25_v10 }
   0xb   :  { %39 = vadd.xlane.f32.xlu0 %v38_v9  ;;  %45 = vadd.xlane.f32.xlu1 %v44_v13  ;;  %v41_v18 = vsel %vm37_vm0, %v33_v15, 0.0  ;;  %v71_v24 = vadd.s32 4294967288, %v221_v23  ;;  %v75_v26 = vadd.s32 4294967280, %v221_v23  ;;  %v79_v27 = vadd.s32 4294967272, %v221_v23 }
   0xc   :  { %v50_v17 = vsel %vm37_vm0, %v36_v14, 0.0  ;;  %v47_v19 = vsel %vm37_vm0, %v35_v16, 0.0  ;;  %v83_v31 = vadd.s32 4294967264, %v221_v23  ;;  %v128_v10 = vshrl.u32 %v53_v20, 7 }
   0xd   :  { %51 = vadd.xlane.f32.xlu2 %v50_v17  ;;  %vm130_vm10 = vcmp.eq.s32.totalorder %v221_v23, 0 }
   0xe   :  { %v58_v40 = vstv %s223_s1  ;;  %vm129_vm9 = vcmp.eq.s32.totalorder %v128_v10, 0 }
   0xf   :  { %vm59_vm5 = vcmp.lt.s32.totalorder %v221_v23, %v58_v40  ;;  %v119_v1 = vstv %s139_s2  ;;  %vm131_vm11 = vmand %vm129_vm9, %vm130_vm10 }
  0x10   :  { %vm120_vm7 = vcmp.lt.s32.totalorder %v221_v23, %v119_v1 }
  0x13   :  { %42 = vadd.xlane.f32.xlu0 %v41_v18  ;;  %48 = vadd.xlane.f32.xlu1 %v47_v19 }
  0x7e   :  { %v40_v21 = vpop.xlane.xlu0 %39  ;;  %v46_v22 = vpop.xlane.xlu1 %45 }
  0x7f   :  { %v60_v28 = vsub.f32 0.0, %v40_v21  ;;  %v62_v29 = vsub.f32 0.0, %v46_v22  ;;  %v70_v33 = vperm.slane %v40_v21, %v221_v23  ;;  %v76_v37 = vperm.slane %v46_v22, %v75_v26 }
  0x80   :  { %v52_v25 = vpop.xlane.xlu2 %51 }
  0x81   :  { %v64_v32 = vsub.f32 0.0, %v52_v25  ;;  %v93_v41 = vperm.slane %v60_v28, %v221_v23  ;;  %v96_v42 = vperm.slane %v62_v29, %v75_v26  ;;  %v84_v47 = vperm.slane %v52_v25, %v83_v31 }
  0x83   :  { %v100_v48 = vperm.slane %v64_v32, %v83_v31 }
  0x86   :  { %v43_v30 = vpop.xlane.xlu0 %42  ;;  %v49_v36 = vpop.xlane.xlu1 %48 }
  0x87   :  { %v61_v34 = vsub.f32 0.0, %v43_v30  ;;  %v72_v35 = vperm.slane %v43_v30, %v71_v24  ;;  %v63_v38 = vsub.f32 0.0, %v49_v36  ;;  %v80_v39 = vperm.slane %v49_v36, %v79_v27 }
  0x89   :  { %v74_v43 = vsel %vm73_vm1, %v72_v35, %v70_v33  ;;  %v94_v44 = vperm.slane %v61_v34, %v71_v24  ;;  %v98_v46 = vperm.slane %v63_v38, %v79_v27 }
  0x8a   :  { %v78_v45 = vsel %vm77_vm2, %v76_v37, %v74_v43 }
  0x8b   :  { %v95_v49 = vsel %vm73_vm1, %v94_v44, %v93_v41  ;;  %v82_v50 = vsel %vm81_vm3, %v80_v39, %v78_v45 }
  0x8c   :  { %v97_v51 = vsel %vm77_vm2, %v96_v42, %v95_v49  ;;  %v86_v53 = vsel %vm85_vm4, %v84_v47, %v82_v50 }
  0x8d   :  { %v99_v52 = vsel %vm81_vm3, %v98_v46, %v97_v51 }
  0x8e   :  { %v101_v54 = vsel %vm85_vm4, %v100_v48, %v99_v52 }
  0x8f   :  { %v103_v55 = vsel %vm59_vm5, %v86_v53, %v101_v54 }
  0x90   :  { %v105_v56 = vand.u32 2147483647, %v103_v55  ;;  %v104_v4 = vmin.f32 %v103_v55, 0.0 }
  0x92   :  { %v106_v57 = vsub.f32 0.0, %v105_v56 }
  0x94   :  { %v107_v58 = vmul.f32 1.442695, %v106_v57 }
  0x96   :  { %143 = vpow2.f32 %v107_v58 }
  0x9c   :  { %v144_v59 = vpop.eup %143 }
  0x9d   :  { %v109_v60 = vadd.f32 1.0, %v144_v59  ;;  %v112_v61 = vmul.f32 -0.5, %v144_v59  ;;  %v115_v63 = vand.u32 2147483647, %v144_v59 }
  0x9f   :  { %145 = vlog2.f32 %v109_v60  ;;  %v113_v62 = vadd.f32 1.0, %v112_v61  ;;  %vm116_vm6 = vcmp.lt.f32.partialorder %v115_v63, 0.0004427343 }
  0xa1   :  { %v114_v3 = vmul.f32 %v144_v59, %v113_v62 }
  0xa5   :  { %v146_v0 = vpop.eup %145 }
  0xa6   :  { %v111_v2 = vmul.f32 0.6931472, %v146_v0 }
  0xa8   :  { %v117_v5 = vsel %vm116_vm6, %v114_v3, %v111_v2 }
  0xa9   :  { %v118_v6 = vsub.f32 %v104_v4, %v117_v5 }
  0xab   :  { %v121_v7 = vsel %vm120_vm7, %v118_v6, 0.0 }
  0xac   :  { %v123_v8 = vsel %vm122_vm8, %v121_v7, 0.0 }
  0xad   :  { %124 = vadd.xlane.f32.xlu2 %v123_v8 }
 0x120   :  { %v125_v9 = vpop.xlane.xlu2 %124 }
 0x121   :  { %140 = vpush %v125_v9 }
 0x152   :  { %s141_s8 = spop %140 }
 0x153   :  { %v132_v11 = vstv %s141_s8 }
 0x154   :  { %v133_v12 = vsel %vm131_vm11, %v132_v11, 0.0 }
 0x155   :  { %134 = vst [vmem:[%s248_s3] sm:$0xff] %v133_v12 }

</bundles_post_ra>
